<compile_context>
chip_gen: v6e
topology: v6e:2x2x1
jax: 0.10.0
libtpu: 0.0.40
codegen_flags: <defaults>
</compile_context>

<pallas_src>
import jax
import jax.numpy as jnp
from jax.experimental import pallas as pl
from jax.experimental.pallas import tpu as pltpu


def _round_up(v, m):
    return ((v + m - 1) // m) * m


def _gin_kernel(eps_ref, adj_ref, x_ref, xs_ref, w1_ref, b1_ref, w2_ref, b2_ref,
                out_ref, acc_ref):
    k = pl.program_id(1)

    # First K step: seed the accumulator with the self term (1 + eps) * X[i-block].
    @pl.when(k == 0)
    def _():
        acc_ref[...] = (1.0 + eps_ref[0]) * xs_ref[...]

    # Partial neighbor aggregation: acc += A[i-block, k-block] @ X[k-block, :].
    # adj tile is bf16 in HBM/VMEM (exact for {0,1}); accumulate in f32 on the MXU.
    acc_ref[...] += jnp.dot(adj_ref[...].astype(jnp.float32), x_ref[...],
                            preferred_element_type=jnp.float32)

    # Last K step: run the 2-layer MLP and store the lane-dense output block.
    @pl.when(k == pl.num_programs(1) - 1)
    def _():
        h = acc_ref[...]
        h1 = jnp.dot(h, w1_ref[...], preferred_element_type=jnp.float32)
        h1 = jnp.maximum(h1 + b1_ref[...], 0.0)
        h2 = jnp.dot(h1, w2_ref[...], preferred_element_type=jnp.float32)
        out_ref[...] = (h2 + b2_ref[...]).astype(out_ref.dtype)


def gin_layer(adj, x, w1, b1, w2, b2, eps=0.0, *, tm=256, tk=512):
    """GINLayer forward. adj: [N, N] dense {0,1} adjacency, x: [N, in_feats]."""
    n, f_in = x.shape
    f_out = w1.shape[1]
    b1 = jnp.asarray(b1).reshape(1, -1)
    b2 = jnp.asarray(b2).reshape(1, -1)

    # Lane-dense feature padding (last dims -> multiples of 128 lanes).
    f_in_p = _round_up(f_in, 128)
    f_out_p = _round_up(f_out, 128)

    # Tile sizes: respect the (8, 128) tiling constraint, shrink for tiny graphs.
    tm = min(tm, _round_up(n, 8))      # row tile (sublane axis): multiple of 8
    tk = min(tk, _round_up(n, 128))    # contraction tile (lane axis): multiple of 128
    n_r = _round_up(n, tm)             # padded row count
    n_k = _round_up(n, tk)             # padded contraction count
    n_x = max(n_r, n_k)                # X must cover both the k-blocks and i-blocks

    # Zero-pad operands; adjacency stored as bf16 (exact for {0,1} entries).
    adj_p = jnp.zeros((n_r, n_k), jnp.bfloat16).at[:n, :n].set(adj.astype(jnp.bfloat16))
    x_p = jnp.zeros((n_x, f_in_p), jnp.float32).at[:n, :f_in].set(x.astype(jnp.float32))
    w1_p = jnp.zeros((f_in_p, f_out_p), jnp.float32).at[:f_in, :f_out].set(
        jnp.asarray(w1, jnp.float32))
    b1_p = jnp.zeros((1, f_out_p), jnp.float32).at[:, :f_out].set(b1.astype(jnp.float32))
    w2_p = jnp.zeros((f_out_p, f_out_p), jnp.float32).at[:f_out, :f_out].set(
        jnp.asarray(w2, jnp.float32))
    b2_p = jnp.zeros((1, f_out_p), jnp.float32).at[:, :f_out].set(b2.astype(jnp.float32))
    eps_arr = jnp.asarray([eps], dtype=jnp.float32)   # fixed float or traced (learn_eps)

    grid = (n_r // tm, n_k // tk)

    cost = pl.CostEstimate(
        flops=(2 * n_r * n_k * f_in_p            # aggregation matmul
               + 2 * n_r * f_in_p * f_out_p      # first MLP layer
               + 2 * n_r * f_out_p * f_out_p),   # second MLP layer
        transcendentals=0,
        bytes_accessed=(adj_p.size * 2
                        + x_p.size * 4 * grid[0]     # X re-read once per row block
                        + n_r * f_in_p * 4           # self-term X blocks
                        + (w1_p.size + b1_p.size + w2_p.size + b2_p.size) * 4
                        + n_r * f_out_p * 4),
    )

    out_p = pl.pallas_call(
        _gin_kernel,
        out_shape=jax.ShapeDtypeStruct((n_r, f_out_p), x.dtype),
        grid_spec=pltpu.PrefetchScalarGridSpec(
            num_scalar_prefetch=0,
            grid=grid,
            in_specs=[
                pl.BlockSpec(memory_space=pltpu.MemorySpace.SMEM),        # eps scalar
                pl.BlockSpec((tm, tk), lambda i, k: (i, k)),              # adj tile
                pl.BlockSpec((tk, f_in_p), lambda i, k: (k, 0)),          # X (neighbor rows)
                pl.BlockSpec((tm, f_in_p), lambda i, k: (i, 0)),          # X (self rows, resident)
                pl.BlockSpec((f_in_p, f_out_p), lambda i, k: (0, 0)),     # W1 (resident)
                pl.BlockSpec((1, f_out_p), lambda i, k: (0, 0)),          # b1
                pl.BlockSpec((f_out_p, f_out_p), lambda i, k: (0, 0)),    # W2
                pl.BlockSpec((1, f_out_p), lambda i, k: (0, 0)),          # b2
            ],
            out_specs=pl.BlockSpec((tm, f_out_p), lambda i, k: (i, 0)),
            scratch_shapes=[pltpu.VMEM((tm, f_in_p), jnp.float32)],       # h accumulator
        ),
        compiler_params=pltpu.CompilerParams(
            dimension_semantics=("parallel", "arbitrary")),
        cost_estimate=cost,
    )(eps_arr, adj_p, x_p, x_p, w1_p, b1_p, w2_p, b2_p)

    # Slice away row/feature padding.
    return out_p[:n, :f_out]


def _reference(adj, x, w1, b1, w2, b2, eps=0.0):
    neigh = adj @ x
    h = (1.0 + eps) * x + neigh
    h1 = jnp.maximum(h @ w1 + b1, 0.0)
    return h1 @ w2 + b2


if __name__ == "__main__":
    N, IN_FEATS, OUT_FEATS = 256, 64, 32

    key = jax.random.PRNGKey(0)
    k_adj, k_x, k_w1, k_b1, k_w2, k_b2 = jax.random.split(key, 6)

    # Deterministic synthetic graph (dense 0/1 adjacency) and features.
    adj = (jax.random.uniform(k_adj, (N, N)) < 0.1).astype(jnp.float32)
    x = jax.random.normal(k_x, (N, IN_FEATS), dtype=jnp.float32)

    # Deterministic Linear params (PyTorch-style uniform(-1/sqrt(fan_in), +)).
    lim1 = 1.0 / (IN_FEATS ** 0.5)
    lim2 = 1.0 / (OUT_FEATS ** 0.5)
    w1 = jax.random.uniform(k_w1, (IN_FEATS, OUT_FEATS), minval=-lim1, maxval=lim1)
    b1 = jax.random.uniform(k_b1, (1, OUT_FEATS), minval=-lim1, maxval=lim1)
    w2 = jax.random.uniform(k_w2, (OUT_FEATS, OUT_FEATS), minval=-lim2, maxval=lim2)
    b2 = jax.random.uniform(k_b2, (1, OUT_FEATS), minval=-lim2, maxval=lim2)

    # Small tiles so the toy size still exercises a multi-step (2, 2) grid
    # (row blocks + K-reduction accumulator path + in-kernel self term).
    for eps in (0.0, 0.25):   # default module eps and a non-zero / learn_eps-style value
        out = gin_layer(adj, x, w1, b1, w2, b2, eps=eps, tm=128, tk=128)
        out = jax.block_until_ready(out)
        ref = _reference(adj, x, w1, b1, w2, b2, eps=eps)
        assert out.shape == (N, OUT_FEATS)
        assert jnp.allclose(out, ref, atol=5e-4, rtol=5e-4)

    print("KERNEL_OK")
</pallas_src>

<mosaic_0001>
module attributes {stable_mosaic.version = 11 : i64} {
  func.func @_gin_kernel(%arg0: i32, %arg1: i32, %arg2: memref<1xf32, #tpu.memory_space<smem>>, %arg3: memref<128x128xbf16, #tpu.memory_space<vmem>>, %arg4: memref<128x128xf32, #tpu.memory_space<vmem>>, %arg5: memref<128x128xf32, #tpu.memory_space<vmem>>, %arg6: memref<128x128xf32, #tpu.memory_space<vmem>>, %arg7: memref<1x128xf32, #tpu.memory_space<vmem>>, %arg8: memref<128x128xf32, #tpu.memory_space<vmem>>, %arg9: memref<1x128xf32, #tpu.memory_space<vmem>>, %arg10: memref<128x128xf32, #tpu.memory_space<vmem>>, %arg11: memref<128x128xf32, #tpu.memory_space<vmem>>) attributes {dimension_semantics = [#tpu.dimension_semantics<parallel>, #tpu.dimension_semantics<arbitrary>], iteration_bounds = array<i64: 2, 2>, scalar_prefetch = 0 : i64, scratch_operands = 1 : i64, tpu.core_type = #tpu.core_type<tc>, window_params = [{transform_indices = @transform_0, window_bounds = array<i64: 1>}, {transform_indices = @transform_1, window_bounds = array<i64: 128, 128>}, {transform_indices = @transform_2, window_bounds = array<i64: 128, 128>}, {transform_indices = @transform_3, window_bounds = array<i64: 128, 128>}, {pipeline_mode = #tpu.pipeline_mode<synchronous>, transform_indices = @transform_4, window_bounds = array<i64: 128, 128>}, {pipeline_mode = #tpu.pipeline_mode<synchronous>, transform_indices = @transform_5, window_bounds = array<i64: 1, 128>}, {pipeline_mode = #tpu.pipeline_mode<synchronous>, transform_indices = @transform_6, window_bounds = array<i64: 128, 128>}, {pipeline_mode = #tpu.pipeline_mode<synchronous>, transform_indices = @transform_7, window_bounds = array<i64: 1, 128>}, {transform_indices = @transform_8, window_bounds = array<i64: 128, 128>}]} {
    %c0_i32 = arith.constant 0 : i32
    %0 = arith.cmpi eq, %arg1, %c0_i32 : i32
    %1 = arith.extui %0 : i1 to i32
    %c0_i32_0 = arith.constant 0 : i32
    %2 = arith.cmpi ne, %1, %c0_i32_0 : i32
    scf.if %2 {
      %c0_9 = arith.constant 0 : index
      %13 = memref.load %arg2[%c0_9] : memref<1xf32, #tpu.memory_space<smem>>
      %cst_10 = arith.constant 1.000000e+00 : f32
      %14 = arith.addf %cst_10, %13 : f32
      %c0_11 = arith.constant 0 : index
      %c0_12 = arith.constant 0 : index
      %15 = vector.load %arg5[%c0_11, %c0_12] : memref<128x128xf32, #tpu.memory_space<vmem>>, vector<128x128xf32>
      %16 = vector.broadcast %14 : f32 to vector<128x128xf32>
      %17 = arith.mulf %16, %15 : vector<128x128xf32>
      %c0_13 = arith.constant 0 : index
      %c0_14 = arith.constant 0 : index
      %18 = vector.load %arg11[%c0_13, %c0_14] : memref<128x128xf32, #tpu.memory_space<vmem>>, vector<128x128xf32>
      tpu.vector_store %arg11[%c0_13, %c0_14], %17 {strides = array<i32>} : memref<128x128xf32, #tpu.memory_space<vmem>>, vector<128x128xf32>,
    } else {
    }
    %c0 = arith.constant 0 : index
    %c0_1 = arith.constant 0 : index
    %3 = vector.load %arg11[%c0, %c0_1] : memref<128x128xf32, #tpu.memory_space<vmem>>, vector<128x128xf32>
    %c0_2 = arith.constant 0 : index
    %c0_3 = arith.constant 0 : index
    %4 = vector.load %arg3[%c0_2, %c0_3] : memref<128x128xbf16, #tpu.memory_space<vmem>>, vector<128x128xbf16>
    %5 = arith.extf %4 : vector<128x128xbf16> to vector<128x128xf32>
    %c0_4 = arith.constant 0 : index
    %c0_5 = arith.constant 0 : index
    %6 = vector.load %arg4[%c0_4, %c0_5] : memref<128x128xf32, #tpu.memory_space<vmem>>, vector<128x128xf32>
    %cst = arith.constant dense<0.000000e+00> : vector<128x128xf32>
    %7 = tpu.matmul %5, %6, %cst {dimension_numbers = #tpu.dot_dimension_numbers<[1], [0], [0], [1], [0, 0, 1, 1], [], []>} : vector<128x128xf32>, vector<128x128xf32>, vector<128x128xf32> -> vector<128x128xf32>
    %8 = arith.addf %3, %7 : vector<128x128xf32>
    %c0_6 = arith.constant 0 : index
    %c0_7 = arith.constant 0 : index
    %9 = vector.load %arg11[%c0_6, %c0_7] : memref<128x128xf32, #tpu.memory_space<vmem>>, vector<128x128xf32>
    tpu.vector_store %arg11[%c0_6, %c0_7], %8 {strides = array<i32>} : memref<128x128xf32, #tpu.memory_space<vmem>>, vector<128x128xf32>,
    %c1_i32 = arith.constant 1 : i32
    %10 = arith.cmpi eq, %arg1, %c1_i32 : i32
    %11 = arith.extui %10 : i1 to i32
    %c0_i32_8 = arith.constant 0 : i32
    %12 = arith.cmpi ne, %11, %c0_i32_8 : i32
    scf.if %12 {
      %c0_9 = arith.constant 0 : index
      %c0_10 = arith.constant 0 : index
      %13 = vector.load %arg11[%c0_9, %c0_10] : memref<128x128xf32, #tpu.memory_space<vmem>>, vector<128x128xf32>
      %c0_11 = arith.constant 0 : index
      %c0_12 = arith.constant 0 : index
      %14 = vector.load %arg6[%c0_11, %c0_12] : memref<128x128xf32, #tpu.memory_space<vmem>>, vector<128x128xf32>
      %cst_13 = arith.constant dense<0.000000e+00> : vector<128x128xf32>
      %15 = tpu.matmul %13, %14, %cst_13 {dimension_numbers = #tpu.dot_dimension_numbers<[1], [0], [0], [1], [0, 0, 1, 1], [], []>} : vector<128x128xf32>, vector<128x128xf32>, vector<128x128xf32> -> vector<128x128xf32>
      %c0_14 = arith.constant 0 : index
      %c0_15 = arith.constant 0 : index
      %16 = vector.load %arg7[%c0_14, %c0_15] : memref<1x128xf32, #tpu.memory_space<vmem>>, vector<1x128xf32>
      %17 = vector.broadcast %16 : vector<1x128xf32> to vector<128x128xf32>
      %18 = arith.addf %15, %17 : vector<128x128xf32>
      %cst_16 = arith.constant 0.000000e+00 : f32
      %19 = vector.broadcast %cst_16 : f32 to vector<128x128xf32>
      %20 = arith.maximumf %18, %19 : vector<128x128xf32>
      %c0_17 = arith.constant 0 : index
      %c0_18 = arith.constant 0 : index
      %21 = vector.load %arg8[%c0_17, %c0_18] : memref<128x128xf32, #tpu.memory_space<vmem>>, vector<128x128xf32>
      %cst_19 = arith.constant dense<0.000000e+00> : vector<128x128xf32>
      %22 = tpu.matmul %20, %21, %cst_19 {dimension_numbers = #tpu.dot_dimension_numbers<[1], [0], [0], [1], [0, 0, 1, 1], [], []>} : vector<128x128xf32>, vector<128x128xf32>, vector<128x128xf32> -> vector<128x128xf32>
      %c0_20 = arith.constant 0 : index
      %c0_21 = arith.constant 0 : index
      %23 = vector.load %arg9[%c0_20, %c0_21] : memref<1x128xf32, #tpu.memory_space<vmem>>, vector<1x128xf32>
      %24 = vector.broadcast %23 : vector<1x128xf32> to vector<128x128xf32>
      %25 = arith.addf %22, %24 : vector<128x128xf32>
      %c0_22 = arith.constant 0 : index
      %c0_23 = arith.constant 0 : index
      %26 = vector.load %arg10[%c0_22, %c0_23] : memref<128x128xf32, #tpu.memory_space<vmem>>, vector<128x128xf32>
      tpu.vector_store %arg10[%c0_22, %c0_23], %25 {strides = array<i32>} : memref<128x128xf32, #tpu.memory_space<vmem>>, vector<128x128xf32>,
    } else {
    }
    return
  }
  func.func @transform_0(%arg0: i32, %arg1: i32) -> i32 {
    %c0_i32 = arith.constant 0 : i32
    %c0_i32_0 = arith.constant 0 : i32
    return %c0_i32 : i32
  }
  func.func @transform_1(%arg0: i32, %arg1: i32) -> (i32, i32) {
    %c0_i32 = arith.constant 0 : i32
    return %arg0, %arg1 : i32, i32
  }
  func.func @transform_2(%arg0: i32, %arg1: i32) -> (i32, i32) {
    %c0_i32 = arith.constant 0 : i32
    %c0_i32_0 = arith.constant 0 : i32
    return %arg1, %c0_i32 : i32, i32
  }
  func.func @transform_3(%arg0: i32, %arg1: i32) -> (i32, i32) {
    %c0_i32 = arith.constant 0 : i32
    %c0_i32_0 = arith.constant 0 : i32
    return %arg0, %c0_i32 : i32, i32
  }
  func.func @transform_4(%arg0: i32, %arg1: i32) -> (i32, i32) {
    %c0_i32 = arith.constant 0 : i32
    %c0_i32_0 = arith.constant 0 : i32
    %c0_i32_1 = arith.constant 0 : i32
    return %c0_i32, %c0_i32_0 : i32, i32
  }
  func.func @transform_5(%arg0: i32, %arg1: i32) -> (i32, i32) {
    %c0_i32 = arith.constant 0 : i32
    %c0_i32_0 = arith.constant 0 : i32
    %c0_i32_1 = arith.constant 0 : i32
    return %c0_i32, %c0_i32_0 : i32, i32
  }
  func.func @transform_6(%arg0: i32, %arg1: i32) -> (i32, i32) {
    %c0_i32 = arith.constant 0 : i32
    %c0_i32_0 = arith.constant 0 : i32
    %c0_i32_1 = arith.constant 0 : i32
    return %c0_i32, %c0_i32_0 : i32, i32
  }
  func.func @transform_7(%arg0: i32, %arg1: i32) -> (i32, i32) {
    %c0_i32 = arith.constant 0 : i32
    %c0_i32_0 = arith.constant 0 : i32
    %c0_i32_1 = arith.constant 0 : i32
    return %c0_i32, %c0_i32_0 : i32, i32
  }
  func.func @transform_8(%arg0: i32, %arg1: i32) -> (i32, i32) {
    %c0_i32 = arith.constant 0 : i32
    %c0_i32_0 = arith.constant 0 : i32
    return %arg0, %c0_i32 : i32, i32
  }
}

</mosaic_0001>

<bundles_post_ra>
// kernel: tpu_custom_call.1
= control target key start
LH: loop header
LB: loop body
LE: loop exit
PB: predicated region body
PF: predicated region fallthrough
CT: control target
= control target key end

     0   :  { %s2610_s0 = inlined_call_operand.<no memory space> [shape: f32[1], index: 0, kind: input, shape index: {}]   ;;  %s2611_s1 = inlined_call_operand.hbm [shape: bf16[256,256], index: 1, kind: input, shape index: {}]   ;;  %s2612_s2 = inlined_call_operand.hbm [shape: f32[256,128], index: 2, kind: input, shape index: {}]   ;;  %s2613_s3 = inlined_call_operand.hbm [shape: f32[256,128], index: 3, kind: input, shape index: {}]   ;;  %s2614_s4 = inlined_call_operand.hbm [shape: f32[128,128], index: 4, kind: input, shape index: {}]   ;;  %s2615_s5 = inlined_call_operand.vmem [shape: f32[1,128], index: 5, kind: input, shape index: {}]   ;;  %s2616_s6 = inlined_call_operand.hbm [shape: f32[128,128], index: 6, kind: input, shape index: {}]   ;;  %s2617_s7 = inlined_call_operand.vmem [shape: f32[1,128], index: 7, kind: input, shape index: {}]   ;;  %s2618_s8 = inlined_call_operand.hbm [shape: f32[256,128], index: 8, kind: output, shape index: {}]  }
   0x1   :  { %2635 = sst [smem:[#allocation27_spill]] %s2611_s1 }
   0x2   :  { %2636 = sst [smem:[#allocation28_spill]] %s2612_s2 }
   0x3   :  { %2637 = sst [smem:[#allocation29_spill]] %s2613_s3 }
   0x4   :  { %2638 = sst [smem:[#allocation30_spill]] %s2614_s4 }
   0x5   :  { %2639 = sst [smem:[#allocation31_spill]] %s2615_s5 }
   0x6   :  { %2640 = sst [smem:[#allocation32_spill]] %s2616_s6 }
   0x7   :  { %2641 = sst [smem:[#allocation33_spill]] %s2617_s7 }
   0x8   :  { %2642 = sst [smem:[#allocation34_spill]] %s2618_s8 }
   0x9   :  { %13 = sst [smem:[#allocation3]] %s2610_s0 }
   0xa   :  { %14 = vsyncpa [#allocation5], 0 }
   0xb   :  { %16 = vsyncpa [#allocation5 + $0x1], 0 }
   0xc   :  { %17 = vsyncpa [#allocation8], 0 }
   0xd   :  { %19 = vsyncpa [#allocation8 + $0x1], 0 }
   0xe   :  { %20 = vsyncpa [#allocation11], 0 }
   0xf   :  { %21 = vsyncpa [#allocation6], 0 }
  0x10   :  { %23 = vsyncpa [#allocation6 + $0x1], 0  ;;  %s2185_s29 = smov 0   ;;  %s2187_s30 = smov 0  }
  0x11   :  { %s2189_s9 = smov 0   ;;  %s2191_s10 = smov 0  }
  0x12   :  { %s2193_s11 = smov 0   ;;  %s2195_s12 = smov 0  }
  0x13   :  { %s2197_s0 = smov 0   ;;  %s2199_s13 = smov 0  }
  0x14   :  { %s2201_s14 = smov 0   ;;  %s2203_s15 = smov 0  }
  0x15   :  { %s2205_s16 = smov 0   ;;  %s2207_s17 = smov 0  }
  0x16   :  { %s2209_s18 = smov 0   ;;  %s2211_s19 = smov 0  }
  0x17 LB: > { %2643 = sst [smem:[#allocation19_spill]] %s2087_s11  ;;  %s2256_s20 = sadd.s32 4294967295, %s2123_s19   ;;  %s2123_s19 = sphi %s2211_s19, %s29_s19   ;;  %s2119_s18 = sphi %s2209_s18, %s2708_s18   ;;  %s2115_s17 = sphi %s2207_s17, %s2707_s17   ;;  %s2111_s16 = sphi %s2205_s16, %s2706_s16   ;;  %s2107_s15 = sphi %s2203_s15, %s2705_s15   ;;  %s2103_s14 = sphi %s2201_s14, %s2704_s14   ;;  %s2099_s13 = sphi %s2199_s13, %s2703_s13   ;;  %s2095_s0 = sphi %s2197_s0, %s2702_s0   ;;  %s2091_s12 = sphi %s2195_s12, %s2701_s12   ;;  %s2087_s11 = sphi %s2193_s11, %s2700_s11   ;;  %s2083_s10 = sphi %s2191_s10, %s2693_s10   ;;  %s2079_s9 = sphi %s2189_s9, %s2699_s9   ;;  %s2075_s30 = sphi %s2187_s30, %s2698_s30   ;;  %s2071_s29 = sphi %s2185_s29, %s2697_s29  }
  0x18   : > { %2644 = sst [smem:[#allocation20_spill]] %s2107_s15  ;;  %p1299_p0 = scmp.ge.s32.totalorder %s2123_s19, 1 }
  0x19   : > { %2645 = sst [smem:[#allocation21_spill]] %s2111_s16  ;;  %p2631_p1 = scmp.eq.s32.totalorder %s2256_s20, 0 }
  0x1a   : > { %p257_p3 = scmp.lt.s32.totalorder %s2123_s19, 5  ;;  %s2125_s22 = smov [#allocation10]  }
  0x1b   : > { %s272_s23 = sshll.u32 %s2125_s22, 4  ;;  %s273_s23 = int_to_ptr.vmem [resolvable:$true] %s272_s23 }
  0x1c   : > { %p2262_p4 = pnand %p1299_p0, %p257_p3  ;;  %s1842_s25 = scalar_lea.vmem %s273_s23, 2048 }
  0x1d   : > { %p1843_p8 = scmp.ne.s32.totalorder %s273_s23, %s1842_s25  ;;  %p1850_p11 = scmp.lt.s32.totalorder %s273_s23, %s273_s23 }
  0x1e   : > { %s2646_s21 = scalar_select %p2262_p4, 1, 0 }
  0x1f   : > { %p1684_p5 = pneg %p2262_p4  ;;  %p1851_p12 = scmp.lt.s32.totalorder %s1842_s25, %s1842_s25 }
  0x20   : > { %2647 = sst [smem:[#allocation22_spill]] %s2646_s21 }
  0x21   : > { %p2270_p6 = pnand %p1684_p5, %p2631_p1  ;;  %p1852_p13 = por %p1851_p12, %p1850_p11 }
  0x23   : > { %p1833_p7 = pneg %p2270_p6 }
  0x25   : > { %p1845_p9 = pnand %p1843_p8, %p1833_p7 }
  0x27   : > { %p1846_p10 = pneg %p1845_p9 }
  0x29   : > { %p1853_p0 = pnand %p1852_p13, %p1846_p10 }
  0x2b   : > { %1856 = shalt.err (!%p1853_p0)
}
  0x2c   : > { %s2620_s26 = smov 128   ;;  %s2622_s27 = smov 8  }
  0x2d   : > { %s2649_s4 = sld [smem:[#allocation30_spill]]  ;;  %s38_s25 = sadd.s32 1, %s2115_s17 }
  0x2e   : > { %s41_s8 = sadd.s32 1, %s2119_s18  ;;  %p39_p3 = scmp.ge.s32.totalorder %s38_s25, 2 }
  0x2f   : > { %p2632_p5 = scmp.eq.s32.totalorder %s2123_s19, 0  ;;  %s97_s16 = sadd.s32 1, %s2091_s12 }
  0x30   : > { %p104_p8 = scmp.ne.s32.totalorder %s2091_s12, %s2087_s11  ;;  %s2710_s25 = smov (%p39_p3, %s38_s25), 0 }
  0x31   : > { %2650 = sst [smem:[#allocation23_spill]] %s2710_s25  ;;  %s2712_s8 = smov (!%p39_p3, %s41_s8), %s2119_s18 }
  0x32   : > { %s67_s7 = ssub.s32 %s2115_s17, %s2710_s25  ;;  %p2300_p9 = por %p104_p8, %p2632_p5 }
  0x33   : > { %1687 = dma.hbm_to_vmem [thread:$0]  (!%p2270_p6), %s2649_s4, 2048, %s273_s23, [#allocation11], %s2620_s26, %s2620_s26, %s2622_s27  }
  0x34   : > { %p43_p10 = scmp.ge.s32.totalorder %s2712_s8, 2  ;;  %p95_p11 = scmp.eq.s32.totalorder %s67_s7, 0 }
  0x35   : > { %p110_p12 = scmp.ne.s32.totalorder %s2087_s11, %s2083_s10  ;;  %p2630_p13 = scmp.lt.s32.totalorder %s2123_s19, 4 }
  0x36   : > { %s2714_s8 = smov (%p43_p10, %s2712_s8), 0  ;;  %s328_s4 = sand.u32 1, %s2123_s19  }
  0x37   : > { %2652 = sst [smem:[#allocation24_spill]] %s2714_s8  ;;  %s2314_s22 = ssub.s32 %s2119_s18, %s2714_s8 }
  0x38   : > { %s2310_s28 = scalar_select %p95_p11, %s2091_s12, %s97_s16  }
  0x39   : > { %p2318_p0 = por %p110_p12, %p2631_p1  ;;  %s68_s27 = sor.u32 %s67_s7, %s2314_s22 }
  0x3a   : > { %2653 = sst [smem:[#allocation25_spill]] %s2310_s28  ;;  %p2324_p8 = scmp.eq.s32.totalorder %s68_s27, 0 }
  0x3b   : > { %s2654_s26 = scalar_select %p2318_p0, 1, 0 }
  0x3c   : > { %s330_s25 = sand.u32 1, %s2091_s12   ;;  %s1330_s16 = sshll.u32 %s2115_s17, 11 }
  0x3d   : > { %2655 = sst [smem:[#allocation26_spill]] %s2654_s26  ;;  %s1307_s5 = sshll.u32 %s330_s25, 7 }
  0x3e   : > { %s2657_s2 = sld [smem:[#allocation28_spill]]  ;;  %s332_s11 = scalar_lea.vmem [#allocation7], %s1307_s5 }
  0x3f   : > { %s339_s21 = sshll.u32 %s332_s11, 4  ;;  %p2338_p10 = pnand %p2630_p13, %p2300_p9  ;;  %s340_s21 = int_to_ptr.vmem [resolvable:$true] %s339_s21 }
  0x40   : > { %s2128_s7 = smov [#allocation12]   ;;  %s2342_s3 = scalar_lea.sflag [#allocation8], %s328_s4 }
  0x41   : > { %s288_s27 = sshll.u32 %s2128_s7, 4  ;;  %p1859_p11 = pneg %p2338_p10  ;;  %s289_s27 = int_to_ptr.vmem [resolvable:$true] %s288_s27 }
  0x42   : > { %s1870_s25 = scalar_lea.vmem %s340_s21, 2048  ;;  %s2129_s5 = smov [#allocation7]  }
  0x43   : > { %p1871_p12 = scmp.ne.s32.totalorder %s340_s21, %s1870_s25  ;;  %s1875_s8 = sshll.u32 %s2129_s5, 4  ;;  %s1876_s8 = int_to_ptr.vmem [resolvable:$false] %s1875_s8 }
  0x44   : > { %s338_s15 = scalar_lea.hbm %s2657_s2, %s1330_s16  ;;  %s1877_s11 = scalar_lea.vmem %s1876_s8, 4096 }
  0x45   : > { %p1873_p2 = pnand %p1871_p12, %p1859_p11  ;;  %p1878_p9 = scmp.lt.s32.totalorder %s340_s21, %s1876_s8 }
  0x46   : > { %p1879_p13 = scmp.lt.s32.totalorder %s1877_s11, %s1870_s25 }
  0x47   : > { %p1874_p3 = pneg %p1873_p2 }
  0x48   : > { %p1880_p1 = por %p1879_p13, %p1878_p9 }
  0x4a   : > { %p1881_p5 = pnand %p1880_p1, %p1874_p3 }
  0x4c   : > { %1884 = shalt.err (!%p1881_p5)
}
  0x4d   : > { %s2659_s23 = smov 8   ;;  %s2660_s4 = smov 128  }
  0x4e   : > { %1697 = dma.hbm_to_vmem [thread:$0]  (!%p2338_p10), %s338_s15, 2048, %s340_s21, %s2342_s3, %s2660_s4, %s2660_s4, %s2659_s23  }
  0x4f   : > { %s1896_s28 = scalar_lea.vmem %s289_s27, 2048  ;;  %p1904_p0 = scmp.lt.s32.totalorder %s289_s27, %s289_s27 }
  0x50   : > { %p1897_p2 = scmp.ne.s32.totalorder %s289_s27, %s1896_s28  ;;  %p1905_p4 = scmp.lt.s32.totalorder %s1896_s28, %s1896_s28 }
  0x52   : > { %p1899_p11 = pnand %p1897_p2, %p1833_p7  ;;  %p1906_p13 = por %p1905_p4, %p1904_p0 }
  0x54   : > { %p1900_p12 = pneg %p1899_p11 }
  0x56   : > { %p1907_p1 = pnand %p1906_p13, %p1900_p12 }
  0x58   : > { %1910 = shalt.err (!%p1907_p1)
}
  0x59   : > { %s2661_s6 = sld [smem:[#allocation32_spill]]  ;;  %s71_s15 = sadd.s32 1, %s2103_s14 }
  0x5a   : > { %s2367_s21 = scalar_select %p2324_p8, %s2103_s14, %s71_s15  }
  0x5b   : > { %p78_p4 = scmp.ne.s32.totalorder %s2103_s14, %s2099_s13  ;;  %p84_p7 = scmp.ne.s32.totalorder %s2099_s13, %s2095_s0 }
  0x5c   : > { %s305_s24 = sand.u32 1, %s2103_s14   ;;  %s1329_s7 = sshll.u32 %s2119_s18, 5 }
  0x5d   : > { %p2662_p5 = scmp.eq.s32.totalorder %s2123_s19, 0  ;;  %p2663_p3 = scmp.eq.s32.totalorder %s2256_s20, 0 }
  0x5e   : > { %s1303_s5 = sshll.u32 %s305_s24, 6  ;;  %s315_s8 = sadd.s32 %s2115_s17, %s1329_s7 }
  0x5f   : > { %1690 = dma.hbm_to_vmem [thread:$0]  (!%p2270_p6), %s2661_s6, 2048, %s289_s27, [#allocation11], %s2660_s4, %s2660_s4, %s2659_s23  }
  0x60   : > { %p80_p0 = por %p2662_p5, %p78_p4  ;;  %p2379_p10 = por %p2663_p3, %p84_p7 }
  0x61   : > { %s1306_s11 = sshll.u32 %s315_s8, 6  ;;  %s309_s27 = scalar_lea.vmem [#allocation4], %s1303_s5 }
  0x62   : > { %s318_s28 = sshll.u32 %s309_s27, 4  ;;  %s2665_s1 = sld [smem:[#allocation27_spill]]  ;;  %s319_s28 = int_to_ptr.vmem [resolvable:$true] %s318_s28 }
  0x63   : > { %p2666_p6 = scmp.lt.s32.totalorder %s2123_s19, 4  ;;  %s306_s15 = scalar_lea.sflag [#allocation5], %s305_s24 }
  0x64   : > { %s1924_s2 = scalar_lea.vmem %s319_s28, 1024  ;;  %s2130_s7 = smov [#allocation4]  }
  0x65   : > { %p2389_p8 = pnand %p2666_p6, %p80_p0  ;;  %p1925_p2 = scmp.ne.s32.totalorder %s319_s28, %s1924_s2 }
  0x66   : > { %s1929_s5 = sshll.u32 %s2130_s7, 4  ;;  %s1930_s5 = int_to_ptr.vmem [resolvable:$false] %s1929_s5 }
  0x67   : > { %p1913_p9 = pneg %p2389_p8  ;;  %s1931_s8 = scalar_lea.vmem %s1930_s5, 2048 }
  0x68   : > { %s317_s16 = scalar_lea.hbm %s2665_s1, %s1306_s11  ;;  %p1932_p13 = scmp.lt.s32.totalorder %s319_s28, %s1930_s5 }
  0x69   : > { %p1927_p11 = pnand %p1925_p2, %p1913_p9  ;;  %p1933_p1 = scmp.lt.s32.totalorder %s1931_s8, %s1924_s2 }
  0x6b   : > { %p1928_p12 = pneg %p1927_p11  ;;  %p1934_p4 = por %p1933_p1, %p1932_p13 }
  0x6d   : > { %p1935_p7 = pnand %p1934_p4, %p1928_p12 }
  0x6f   : > { %1938 = shalt.err (!%p1935_p7)
}
  0x70   : > { %s2131_s11 = smov 64   ;;  %s2132_s24 = smov 4  }
  0x71   : > { %1694 = dma.hbm_to_vmem [thread:$0]  (!%p2389_p8), %s317_s16, 1024, %s319_s28, %s306_s15, %s2660_s4, %s2131_s11, %s2132_s24  }
  0x72   : > { %s1298_s2 = sadd.s32 4294967294, %s2123_s19   ;;  %s123_s27 = sadd.s32 1, %s2079_s9 }
  0x73   : > { %p2668_p5 = scmp.eq.s32.totalorder %s2314_s22, 0  ;;  %p130_p0 = scmp.ne.s32.totalorder %s2079_s9, %s2075_s30 }
  0x74   : > { %p136_p3 = scmp.ne.s32.totalorder %s2075_s30, %s2071_s29  ;;  %p250_p6 = scmp.eq.s32.totalorder %s1298_s2, 3 }
  0x75   : > { %s2403_s26 = scalar_select %p2668_p5, %s2079_s9, %s123_s27  }
  0x76   : > { %s351_s10 = sand.u32 1, %s2079_s9   ;;  %p2669_p9 = scmp.eq.s32.totalorder %s2123_s19, 0 }
  0x77   : > { %p2670_p11 = scmp.eq.s32.totalorder %s2256_s20, 0  ;;  %p2672_p13 = scmp.eq.s32.totalorder %s2256_s20, 3 }
  0x78   : > { %p132_p2 = por %p130_p0, %p2669_p9  ;;  %p2424_p8 = por %p250_p6, %p136_p3 }
  0x79   : > { %p2414_p12 = por %p136_p3, %p2670_p11  ;;  %p2420_p1 = por %p2672_p13, %p130_p0 }
  0x7a   : > { %s2674_s22 = scalar_select %p2424_p8, 1, 0 }
  0x7b   : > { %s1310_s16 = sshll.u32 %s351_s10, 7  ;;  %s1331_s0 = sshll.u32 %s2119_s18, 11 }
  0x7c   : > { %s2675_s8 = sld [smem:[#allocation29_spill]]  ;;  %s353_s24 = scalar_lea.vmem [#allocation9], %s1310_s16 }
  0x7d   : > { %s360_s2 = sshll.u32 %s353_s24, 4  ;;  %p2676_p4 = scmp.lt.s32.totalorder %s2123_s19, 4  ;;  %s361_s2 = int_to_ptr.vmem [resolvable:$true] %s360_s2 }
  0x7e   : > { %s1952_s1 = scalar_lea.vmem %s361_s2, 2048  ;;  %s2133_s10 = smov [#allocation9]  }
  0x7f   : > { %p2434_p7 = pnand %p2676_p4, %p132_p2  ;;  %p1953_p0 = scmp.ne.s32.totalorder %s361_s2, %s1952_s1 }
  0x80   : > { %s1957_s6 = sshll.u32 %s2133_s10, 4  ;;  %s1958_s6 = int_to_ptr.vmem [resolvable:$false] %s1957_s6 }
  0x81   : > { %p1941_p5 = pneg %p2434_p7  ;;  %s1959_s15 = scalar_lea.vmem %s1958_s6, 4096 }
  0x82   : > { %s359_s11 = scalar_lea.hbm %s2675_s8, %s1331_s0  ;;  %p1960_p9 = scmp.lt.s32.totalorder %s361_s2, %s1958_s6 }
  0x83   : > { %p1955_p3 = pnand %p1953_p0, %p1941_p5  ;;  %p1961_p11 = scmp.lt.s32.totalorder %s1959_s15, %s1952_s1 }
  0x85   : > { %p1956_p6 = pneg %p1955_p3  ;;  %p1962_p13 = por %p1961_p11, %p1960_p9 }
  0x87   : > { %p1963_p8 = pnand %p1962_p13, %p1956_p6 }
  0x89   : > { %1966 = shalt.err (!%p1963_p8)
}
  0x8a   : > { %1700 = dma.hbm_to_vmem [thread:$0]  (!%p2434_p7), %s359_s11, 2048, %s361_s2, %s2342_s3, %s2660_s4, %s2660_s4, %s2659_s23  }
  0x8b   : > { %s2678_s16 = sld [smem:[#allocation22_spill]] }
  0x91   : > { %p2679_p2 = scmp.ne.s32.totalorder %s2678_s16, 0 }
  0x92   : > { %s374_s0 = sand.u32 (!%p2679_p2), 1, %s2099_s13  }
  0x93   : > { %372 = sbr.rel (%p2679_p2) target bundleno = 924 (0x39c), region = 52  ;;  %s1314_s5 = sshll.u32 (!%p2679_p2), %s374_s0, 6 }
  0x94   : > { %s375_s8 = scalar_lea.sflag (!%p2679_p2), [#allocation5], %s374_s0  ;;  %s2449_s6 = scalar_lea.vmem (!%p2679_p2), [#allocation4], %s1314_s5 }
  0x98   : > { %2050 = dma.done.wait (%p2379_p10), %s375_s8, 1024  }
  0x99   : > { %2052 = vsyncadd (%p2379_p10), %s375_s8, 4294966272  ;;  %s2680_s1 = sld [smem:[#allocation19_spill]]  ;;  %s383_s27 = sand.u32 1, %s2256_s20  }
  0x9a   : > { %s2681_s24 = sld [smem:[#allocation26_spill]]  ;;  %s384_s4 = scalar_lea.sflag [#allocation8], %s383_s27 }
  0x9f   : > { %s385_s3 = sand.u32 1, %s2680_s1  }
  0xa0   : > { %s1315_s23 = sshll.u32 %s385_s3, 7  ;;  %p2682_p8 = scmp.ne.s32.totalorder %s2681_s24, 0 }
  0xa1   : > { %s2457_s11 = scalar_lea.vmem [#allocation7], %s1315_s23 }
  0xa2   : > { %2054 = dma.done.wait (%p2682_p8), %s384_s4, 2048  }
  0xa3   : > { %2056 = vsyncadd (%p2682_p8), %s384_s4, 4294965248  ;;  %s394_s2 = sand.u32 1, %s2075_s30  }
  0xa4   : > { %s1316_s25 = sshll.u32 %s394_s2, 7 }
  0xa5   : > { %s396_s10 = scalar_lea.vmem [#allocation9], %s1316_s25 }
  0xa6   : > { %2058 = dma.done.wait (%p2414_p12), %s384_s4, 2048  }
  0xa7   : > { %2060 = vsyncadd (%p2414_p12), %s384_s4, 4294965248  ;;  %p2683_p10 = scmp.eq.s32.totalorder %s2256_s20, 0 }
  0xa9   : > { %2062 = dma.done.wait (%p2683_p10), [#allocation11], 4096   ;;  %p2684_p4 = pmov %p2683_p10 }
  0xaa   : > { %s2474_s15 = scalar_lea.vmem [#allocation13], %s1316_s25  ;;  %s2685_s16 = sld [smem:[#allocation20_spill]] }
  0xab   : > { %2064 = vsyncadd (%p2684_p4), [#allocation11], 4294963200 }
  0xb0   : > { %p1320_p7 = scmp.ne.s32.totalorder %s2685_s16, 0 }
  0xb1   : > { %s455_s0 = sld [smem:[#allocation3]] (!%p1320_p7) }
  0xb2   : > { %454 = sbr.rel (%p1320_p7) target bundleno = 196 (0xc4), region = 76 }
  0xb7   : > { %v457_v0 = vld [vmem:[%s396_s10] sm:$0xff]  ;;  %v458_v1 = vld [vmem:[%s396_s10 + $0x8] sm:$0xff]  ;;  %v459_v2 = vld [vmem:[%s396_s10 + $0x10] sm:$0xff]  ;;  %s456_s5 = sadd.f32 1.0, %s455_s0 }
  0xb8   : > { %v460_v3 = vld [vmem:[%s396_s10 + $0x18] sm:$0xff]  ;;  %v461_v4 = vld [vmem:[%s396_s10 + $0x20] sm:$0xff]  ;;  %v462_v5 = vld [vmem:[%s396_s10 + $0x28] sm:$0xff] }
  0xb9   : > { %v463_v6 = vld [vmem:[%s396_s10 + $0x30] sm:$0xff]  ;;  %v464_v7 = vld [vmem:[%s396_s10 + $0x38] sm:$0xff]  ;;  %v465_v8 = vld [vmem:[%s396_s10 + $0x40] sm:$0xff]  ;;  %v473_v10 = vstv %s456_s5 }
  0xba   : > { %v466_v9 = vld [vmem:[%s396_s10 + $0x48] sm:$0xff]  ;;  %v467_v11 = vld [vmem:[%s396_s10 + $0x50] sm:$0xff]  ;;  %v468_v12 = vld [vmem:[%s396_s10 + $0x58] sm:$0xff]  ;;  %v474_v14 = vmul.f32 %v473_v10, %v457_v0  ;;  %v475_v15 = vmul.f32 %v473_v10, %v458_v1  ;;  %v476_v16 = vmul.f32 %v473_v10, %v459_v2  ;;  %v477_v17 = vmul.f32 %v473_v10, %v460_v3 }
  0xbb   : > { %v469_v13 = vld [vmem:[%s396_s10 + $0x60] sm:$0xff]  ;;  %v470_v18 = vld [vmem:[%s396_s10 + $0x68] sm:$0xff]  ;;  %v471_v19 = vld [vmem:[%s396_s10 + $0x70] sm:$0xff]  ;;  %v478_v21 = vmul.f32 %v473_v10, %v461_v4  ;;  %v479_v22 = vmul.f32 %v473_v10, %v462_v5  ;;  %v480_v23 = vmul.f32 %v473_v10, %v463_v6  ;;  %v481_v24 = vmul.f32 %v473_v10, %v464_v7 }
  0xbc   : > { %v472_v20 = vld [vmem:[%s396_s10 + $0x78] sm:$0xff]  ;;  %490 = vst [vmem:[#allocation2 + $0x30] sm:$0xff] %v474_v14  ;;  %491 = vst [vmem:[#allocation2] sm:$0xff] %v475_v15  ;;  %v482_v25 = vmul.f32 %v473_v10, %v465_v8  ;;  %v483_v26 = vmul.f32 %v473_v10, %v466_v9  ;;  %v484_v27 = vmul.f32 %v473_v10, %v467_v11 }
  0xbd   : > { %492 = vst [vmem:[#allocation2 + $0x58] sm:$0xff] %v476_v16  ;;  %493 = vst [vmem:[#allocation2 + $0x18] sm:$0xff] %v477_v17  ;;  %v485_v28 = vmul.f32 %v473_v10, %v468_v12  ;;  %v486_v29 = vmul.f32 %v473_v10, %v469_v13  ;;  %v487_v30 = vmul.f32 %v473_v10, %v470_v18 }
  0xbe   : > { %494 = vst [vmem:[#allocation2 + $0x50] sm:$0xff] %v478_v21  ;;  %495 = vst [vmem:[#allocation2 + $0x68] sm:$0xff] %v479_v22  ;;  %v488_v31 = vmul.f32 %v473_v10, %v471_v19  ;;  %v489_v32 = vmul.f32 %v473_v10, %v472_v20 }
  0xbf   : > { %496 = vst [vmem:[#allocation2 + $0x8] sm:$0xff] %v480_v23  ;;  %497 = vst [vmem:[#allocation2 + $0x48] sm:$0xff] %v481_v24 }
  0xc0   : > { %498 = vst [vmem:[#allocation2 + $0x40] sm:$0xff] %v482_v25  ;;  %499 = vst [vmem:[#allocation2 + $0x20] sm:$0xff] %v483_v26 }
  0xc1   : > { %500 = vst [vmem:[#allocation2 + $0x10] sm:$0xff] %v484_v27  ;;  %501 = vst [vmem:[#allocation2 + $0x38] sm:$0xff] %v485_v28 }
  0xc2   : > { %502 = vst [vmem:[#allocation2 + $0x60] sm:$0xff] %v486_v29  ;;  %503 = vst [vmem:[#allocation2 + $0x70] sm:$0xff] %v487_v30 }
  0xc3   : > { %504 = vst [vmem:[#allocation2 + $0x78] sm:$0xff] %v488_v31  ;;  %505 = vst [vmem:[#allocation2 + $0x28] sm:$0xff] %v489_v32 }
  0xc4 PF: > { %v569_v33 = vld [vmem:[%s2457_s11 + $0x78] sm:$0xff]  ;;  %v568_v34 = vld [vmem:[%s2457_s11 + $0x70] sm:$0xff]  ;;  %v567_v35 = vld [vmem:[%s2457_s11 + $0x68] sm:$0xff]  ;;  %s2686_s20 = sld [smem:[#allocation20_spill]] }
  0xc5   : > { %1468 = vmatprep.subr.mxu0 %v569_v33  ;;  %1636 = vmatprep.subr.mxu1 %v569_v33  ;;  %v566_v36 = vld [vmem:[%s2457_s11 + $0x60] sm:$0xff]  ;;  %v565_v37 = vld [vmem:[%s2457_s11 + $0x58] sm:$0xff]  ;;  %v564_v38 = vld [vmem:[%s2457_s11 + $0x50] sm:$0xff] }
  0xc6   : > { %1469 = vmatpush3.msra.mxu0 %v569_v33  ;;  %1652 = vmatpush3.msra.mxu1 %v569_v33  ;;  %v563_v39 = vld [vmem:[%s2457_s11 + $0x48] sm:$0xff]  ;;  %v562_v40 = vld [vmem:[%s2457_s11 + $0x40] sm:$0xff]  ;;  %v561_v41 = vld [vmem:[%s2457_s11 + $0x38] sm:$0xff] }
  0xc7   : > { %1470 = vmatprep.subr.mxu0 %v568_v34  ;;  %1637 = vmatprep.subr.mxu1 %v568_v34  ;;  %v560_v42 = vld [vmem:[%s2457_s11 + $0x30] sm:$0xff]  ;;  %v559_v43 = vld [vmem:[%s2457_s11 + $0x28] sm:$0xff]  ;;  %v558_v44 = vld [vmem:[%s2457_s11 + $0x20] sm:$0xff] }
  0xc8   : > { %1471 = vmatpush3.msra.mxu0 %v568_v34  ;;  %1653 = vmatpush3.msra.mxu1 %v568_v34  ;;  %v557_v45 = vld [vmem:[%s2457_s11 + $0x18] sm:$0xff]  ;;  %v556_v46 = vld [vmem:[%s2457_s11 + $0x10] sm:$0xff]  ;;  %v555_v47 = vld [vmem:[%s2457_s11 + $0x8] sm:$0xff] }
  0xc9   : > { %1472 = vmatprep.subr.mxu0 %v567_v35  ;;  %1638 = vmatprep.subr.mxu1 %v567_v35  ;;  %v1334_v48 = vld [vmem:[%s2449_s6] sm:$0xff]   ;;  %v1365_v51 = vld [vmem:[%s2449_s6 + $0x8] sm:$0xff]   ;;  %v1366_v59 = vld [vmem:[%s2449_s6 + $0x10] sm:$0xff]  }
  0xca   : > { %1473 = vmatpush3.msra.mxu0 %v567_v35  ;;  %1654 = vmatpush3.msra.mxu1 %v567_v35  ;;  %v1368_v49 = vld [vmem:[%s2449_s6 + $0x20] sm:$0xff]   ;;  %v1369_v52 = vld [vmem:[%s2449_s6 + $0x28] sm:$0xff]   ;;  %v1335_v53 = vunpack.c.l.bf16 %v1334_v48  ;;  %v1336_v55 = vunpack.c.h.bf16 %v1334_v48  ;;  %v1339_v57 = vunpack.c.l.bf16 %v1365_v51  ;;  %v1370_v60 = vld [vmem:[%s2449_s6 + $0x30] sm:$0xff]   ;;  %v1340_v61 = vunpack.c.h.bf16 %v1365_v51  ;;  %p1321_p12 = scmp.ne.s32.totalorder %s2686_s20, 1 }
  0xcb   : > { %1474 = vmatprep.subr.mxu0 %v566_v36  ;;  %1639 = vmatprep.subr.mxu1 %v566_v36  ;;  %v554_v50 = vld [vmem:[%s2457_s11] sm:$0xff]  ;;  %v1351_v54 = vunpack.c.l.bf16 %v1368_v49  ;;  %v1352_v56 = vunpack.c.h.bf16 %v1368_v49  ;;  %v1355_v58 = vunpack.c.l.bf16 %v1369_v52  ;;  %v1356_v62 = vunpack.c.h.bf16 %v1369_v52  ;;  %v1367_v1 = vld [vmem:[%s2449_s6 + $0x18] sm:$0xff]   ;;  %v506_v13 = vld [vmem:[#allocation2 + $0x30] sm:$0xff]  ;;  %s2688_s27 = sld [smem:[#allocation33_spill]] (!%p1321_p12) }
  0xcc   : > { %1475 = vmatpush3.msra.mxu0 %v566_v36  ;;  %1655 = vmatpush3.msra.mxu1 %v566_v36  ;;  %v1343_v63 = vunpack.c.l.bf16 %v1366_v59  ;;  %v1359_v0 = vunpack.c.l.bf16 %v1370_v60  ;;  %v1371_v2 = vld [vmem:[%s2449_s6 + $0x38] sm:$0xff]   ;;  %v1344_v3 = vunpack.c.h.bf16 %v1366_v59  ;;  %v1360_v4 = vunpack.c.h.bf16 %v1370_v60  ;;  %v507_v9 = vld [vmem:[#allocation2] sm:$0xff]  ;;  %v516_v26 = vld [vmem:[#allocation2 + $0x10] sm:$0xff]  ;;  %s2687_s6 = sld [smem:[#allocation31_spill]] (!%p1321_p12) }
  0xcd   : > { %1476 = vmatprep.subr.mxu0 %v565_v37  ;;  %1640 = vmatprep.subr.mxu1 %v565_v37  ;;  %v1347_v5 = vunpack.c.l.bf16 %v1367_v1  ;;  %v1363_v6 = vunpack.c.l.bf16 %v1371_v2  ;;  %v1348_v7 = vunpack.c.h.bf16 %v1367_v1  ;;  %v1364_v8 = vunpack.c.h.bf16 %v1371_v2  ;;  %v515_v10 = vld [vmem:[#allocation2 + $0x20] sm:$0xff]  ;;  %v509_v19 = vld [vmem:[#allocation2 + $0x18] sm:$0xff]  ;;  %v511_v31 = vld [vmem:[#allocation2 + $0x68] sm:$0xff] }
  0xce   : > { %1477 = vmatpush3.msra.mxu0 %v565_v37  ;;  %1656 = vmatpush3.msra.mxu1 %v565_v37  ;;  %v514_v14 = vld [vmem:[#allocation2 + $0x40] sm:$0xff]  ;;  %v517_v20 = vld [vmem:[#allocation2 + $0x38] sm:$0xff]  ;;  %v519_v32 = vld [vmem:[#allocation2 + $0x70] sm:$0xff] }
  0xcf   : > { %1478 = vmatprep.subr.mxu0 %v564_v38  ;;  %1641 = vmatprep.subr.mxu1 %v564_v38  ;;  %v508_v25 = vld [vmem:[#allocation2 + $0x58] sm:$0xff]  ;;  %v510_v37 = vld [vmem:[#allocation2 + $0x50] sm:$0xff]  ;;  %v512_v49 = vld [vmem:[#allocation2 + $0x8] sm:$0xff] }
  0xd0   : > { %1479 = vmatpush3.msra.mxu0 %v564_v38  ;;  %1657 = vmatpush3.msra.mxu1 %v564_v38  ;;  %v518_v38 = vld [vmem:[#allocation2 + $0x60] sm:$0xff] }
  0xd1   : > { %1480 = vmatprep.subr.mxu0 %v563_v39  ;;  %1642 = vmatprep.subr.mxu1 %v563_v39 }
  0xd2   : > { %1481 = vmatpush3.msra.mxu0 %v563_v39  ;;  %1658 = vmatpush3.msra.mxu1 %v563_v39 }
  0xd3   : > { %1482 = vmatprep.subr.mxu0 %v562_v40  ;;  %1643 = vmatprep.subr.mxu1 %v562_v40 }
  0xd4   : > { %1483 = vmatpush3.msra.mxu0 %v562_v40  ;;  %1659 = vmatpush3.msra.mxu1 %v562_v40 }
  0xd5   : > { %1484 = vmatprep.subr.mxu0 %v561_v41  ;;  %1644 = vmatprep.subr.mxu1 %v561_v41 }
  0xd6   : > { %1485 = vmatpush3.msra.mxu0 %v561_v41  ;;  %1660 = vmatpush3.msra.mxu1 %v561_v41 }
  0xd7   : > { %1486 = vmatprep.subr.mxu0 %v560_v42  ;;  %1645 = vmatprep.subr.mxu1 %v560_v42 }
  0xd8   : > { %1487 = vmatpush3.msra.mxu0 %v560_v42  ;;  %1661 = vmatpush3.msra.mxu1 %v560_v42 }
  0xd9   : > { %1488 = vmatprep.subr.mxu0 %v559_v43  ;;  %1646 = vmatprep.subr.mxu1 %v559_v43 }
  0xda   : > { %1489 = vmatpush3.msra.mxu0 %v559_v43  ;;  %1662 = vmatpush3.msra.mxu1 %v559_v43  ;;  %v513_v43 = vld [vmem:[#allocation2 + $0x48] sm:$0xff] }
  0xdb   : > { %1490 = vmatprep.subr.mxu0 %v558_v44  ;;  %1647 = vmatprep.subr.mxu1 %v558_v44 }
  0xdc   : > { %1491 = vmatpush3.msra.mxu0 %v558_v44  ;;  %1663 = vmatpush3.msra.mxu1 %v558_v44  ;;  %v521_v44 = vld [vmem:[#allocation2 + $0x28] sm:$0xff] }
  0xdd   : > { %1492 = vmatprep.subr.mxu0 %v557_v45  ;;  %1648 = vmatprep.subr.mxu1 %v557_v45 }
  0xde   : > { %1493 = vmatpush3.msra.mxu0 %v557_v45  ;;  %1664 = vmatpush3.msra.mxu1 %v557_v45 }
  0xdf   : > { %1494 = vmatprep.subr.mxu0 %v556_v46  ;;  %1649 = vmatprep.subr.mxu1 %v556_v46 }
  0xe0   : > { %1495 = vmatpush3.msra.mxu0 %v556_v46  ;;  %1665 = vmatpush3.msra.mxu1 %v556_v46 }
  0xe1   : > { %1496 = vmatprep.subr.mxu0 %v555_v47  ;;  %1650 = vmatprep.subr.mxu1 %v555_v47 }
  0xe2   : > { %1497 = vmatpush3.msra.mxu0 %v555_v47  ;;  %1666 = vmatpush3.msra.mxu1 %v555_v47 }
  0xe3   : > { %1498 = vmatprep.subr.mxu0 %v554_v50  ;;  %1651 = vmatprep.subr.mxu1 %v554_v50 }
  0xe4   : > { %1499 = vmatpush3.msra.mxu0 %v554_v50  ;;  %1667 = vmatpush3.msra.mxu1 %v554_v50  ;;  %v520_v50 = vld [vmem:[#allocation2 + $0x78] sm:$0xff] }
  0xe5   : > { %1500 = vmatprep.mubr.f32.mxu0 %v1335_v53  ;;  %1512 = vmatprep.mubr.f32.mxu1 %v1351_v54 }
  0xe6   : > { %1501 = vmatmul.mubr.f32.vlgmr.msra.gmra.mxu0 %v1336_v55  ;;  %1513 = vmatmul.mubr.f32.vlgmr.msra.gmra.mxu1 %v1352_v56 }
  0xe7   : > { %1503 = vmatprep.mubr.f32.mxu0 %v1339_v57  ;;  %1515 = vmatprep.mubr.f32.mxu1 %v1355_v58 }
  0xea   : > { %1504 = vmatmul.mubr.f32.gmra.mxu0 %v1340_v61  ;;  %1516 = vmatmul.mubr.f32.gmra.mxu1 %v1356_v62 }
  0xeb   : > { %1506 = vmatprep.mubr.f32.mxu0 %v1343_v63  ;;  %1518 = vmatprep.mubr.f32.mxu1 %v1359_v0 }
  0xee   : > { %1507 = vmatmul.mubr.f32.gmra.mxu0 %v1344_v3  ;;  %1519 = vmatmul.mubr.f32.gmra.mxu1 %v1360_v4 }
  0xef   : > { %1509 = vmatprep.mubr.f32.mxu0 %v1347_v5  ;;  %1521 = vmatprep.mubr.f32.mxu1 %v1363_v6 }
  0xf2   : > { %1510 = vmatmul.mubr.f32.gmra.mxu0 %v1348_v7  ;;  %1522 = vmatmul.mubr.f32.gmra.mxu1 %v1364_v8 }
 0x1a6   : > { %v1502_v11 = vpop.f32.mrf.mxu0  ;;  %v1514_v12 = vpop.f32.mrf.mxu1 }
 0x1a7   : > { %v716_v15 = vadd.f32 %v1502_v11, %v507_v9  ;;  %v724_v16 = vadd.f32 %v1514_v12, %v515_v10 }
 0x1a8   : > { %v636_v17 = vpop.f32.mrf.mxu0  ;;  %v676_v18 = vpop.f32.mrf.mxu1 }
 0x1a9   : > { %732 = vst [vmem:[#allocation2] sm:$0xff] %v716_v15  ;;  %740 = vst [vmem:[#allocation2 + $0x20] sm:$0xff] %v724_v16  ;;  %v715_v21 = vadd.f32 %v636_v17, %v506_v13  ;;  %v723_v22 = vadd.f32 %v676_v18, %v514_v14 }
 0x1aa   : > { %v1505_v23 = vpop.f32.mrf.mxu0  ;;  %v1517_v24 = vpop.f32.mrf.mxu1 }
 0x1ab   : > { %731 = vst [vmem:[#allocation2 + $0x30] sm:$0xff] %v715_v21  ;;  %739 = vst [vmem:[#allocation2 + $0x40] sm:$0xff] %v723_v22  ;;  %v718_v27 = vadd.f32 %v1505_v23, %v509_v19  ;;  %v726_v28 = vadd.f32 %v1517_v24, %v517_v20 }
 0x1ac   : > { %v646_v29 = vpop.f32.mrf.mxu0  ;;  %v686_v30 = vpop.f32.mrf.mxu1 }
 0x1ad   : > { %734 = vst [vmem:[#allocation2 + $0x18] sm:$0xff] %v718_v27  ;;  %742 = vst [vmem:[#allocation2 + $0x38] sm:$0xff] %v726_v28  ;;  %v717_v33 = vadd.f32 %v646_v29, %v508_v25  ;;  %v725_v34 = vadd.f32 %v686_v30, %v516_v26 }
 0x1ae   : > { %v1508_v35 = vpop.f32.mrf.mxu0  ;;  %v1520_v36 = vpop.f32.mrf.mxu1 }
 0x1af   : > { %733 = vst [vmem:[#allocation2 + $0x58] sm:$0xff] %v717_v33  ;;  %741 = vst [vmem:[#allocation2 + $0x10] sm:$0xff] %v725_v34  ;;  %v720_v39 = vadd.f32 %v1508_v35, %v511_v31  ;;  %v728_v40 = vadd.f32 %v1520_v36, %v519_v32 }
 0x1b0   : > { %v656_v41 = vpop.f32.mrf.mxu0  ;;  %v696_v42 = vpop.f32.mrf.mxu1 }
 0x1b1   : > { %736 = vst [vmem:[#allocation2 + $0x68] sm:$0xff] %v720_v39  ;;  %744 = vst [vmem:[#allocation2 + $0x70] sm:$0xff] %v728_v40  ;;  %v719_v45 = vadd.f32 %v656_v41, %v510_v37  ;;  %v727_v46 = vadd.f32 %v696_v42, %v518_v38 }
 0x1b2   : > { %v1511_v47 = vpop.f32.mrf.mxu0  ;;  %v1523_v48 = vpop.f32.mrf.mxu1 }
 0x1b3   : > { %735 = vst [vmem:[#allocation2 + $0x50] sm:$0xff] %v719_v45  ;;  %743 = vst [vmem:[#allocation2 + $0x60] sm:$0xff] %v727_v46  ;;  %v722_v51 = vadd.f32 %v1511_v47, %v513_v43  ;;  %v730_v52 = vadd.f32 %v1523_v48, %v521_v44  ;;  %750 = sbr.rel (%p1321_p12) target bundleno = 899 (0x383), region = 80 }
 0x1b4   : > { %v666_v53 = vpop.f32.mrf.mxu0  ;;  %v706_v54 = vpop.f32.mrf.mxu1 }
 0x1b5   : > { %738 = vst [vmem:[#allocation2 + $0x48] sm:$0xff] %v722_v51  ;;  %746 = vst [vmem:[#allocation2 + $0x28] sm:$0xff] %v730_v52  ;;  %v721_v55 = vadd.f32 %v666_v53, %v512_v49  ;;  %v729_v56 = vadd.f32 %v706_v54, %v520_v50 }
 0x1b7   : > { %737 = vst [vmem:[#allocation2 + $0x8] sm:$0xff] %v721_v55  ;;  %745 = vst [vmem:[#allocation2 + $0x78] sm:$0xff] %v729_v56 }
 0x1b8   : > { %v782_v57 = vld [vmem:[#allocation10 + $0x78] sm:$0xff]  ;;  %v781_v58 = vld [vmem:[#allocation10 + $0x70] sm:$0xff]  ;;  %v780_v59 = vld [vmem:[#allocation10 + $0x68] sm:$0xff] }
 0x1b9   : > { %1524 = vmatprep.subr.mxu0 %v782_v57  ;;  %v779_v60 = vld [vmem:[#allocation10 + $0x60] sm:$0xff]  ;;  %v751_v61 = vld [vmem:[#allocation2 + $0x30] sm:$0xff]  ;;  %v778_v62 = vld [vmem:[#allocation10 + $0x58] sm:$0xff] }
 0x1ba   : > { %1525 = vmatpush3.msra.mxu0 %v782_v57  ;;  %1556 = vmatprep.mubr.f32.mxu0 %v751_v61  ;;  %v777_v63 = vld [vmem:[#allocation10 + $0x50] sm:$0xff]  ;;  %v776_v0 = vld [vmem:[#allocation10 + $0x48] sm:$0xff]  ;;  %v966_v1 = vld [vmem:[#allocation12 + $0x78] sm:$0xff] }
 0x1bb   : > { %1526 = vmatprep.subr.mxu0 %v781_v58  ;;  %1580 = vmatprep.subr.mxu1 %v966_v1  ;;  %v965_v2 = vld [vmem:[#allocation12 + $0x70] sm:$0xff]  ;;  %v775_v3 = vld [vmem:[#allocation10 + $0x40] sm:$0xff]  ;;  %v964_v4 = vld [vmem:[#allocation12 + $0x68] sm:$0xff] }
 0x1bc   : > { %1527 = vmatpush3.msra.mxu0 %v781_v58  ;;  %1581 = vmatpush3.msra.mxu1 %v966_v1  ;;  %v774_v5 = vld [vmem:[#allocation10 + $0x38] sm:$0xff]  ;;  %v963_v6 = vld [vmem:[#allocation12 + $0x60] sm:$0xff]  ;;  %v773_v7 = vld [vmem:[#allocation10 + $0x30] sm:$0xff] }
 0x1bd   : > { %1528 = vmatprep.subr.mxu0 %v780_v59  ;;  %1582 = vmatprep.subr.mxu1 %v965_v2  ;;  %v962_v8 = vld [vmem:[#allocation12 + $0x58] sm:$0xff]  ;;  %v772_v9 = vld [vmem:[#allocation10 + $0x28] sm:$0xff]  ;;  %v961_v10 = vld [vmem:[#allocation12 + $0x50] sm:$0xff] }
 0x1be   : > { %1529 = vmatpush3.msra.mxu0 %v780_v59  ;;  %1583 = vmatpush3.msra.mxu1 %v965_v2  ;;  %v771_v11 = vld [vmem:[#allocation10 + $0x20] sm:$0xff]  ;;  %v960_v12 = vld [vmem:[#allocation12 + $0x48] sm:$0xff]  ;;  %v770_v13 = vld [vmem:[#allocation10 + $0x18] sm:$0xff] }
 0x1bf   : > { %1530 = vmatprep.subr.mxu0 %v779_v60  ;;  %1584 = vmatprep.subr.mxu1 %v964_v4  ;;  %v959_v14 = vld [vmem:[#allocation12 + $0x40] sm:$0xff]  ;;  %v769_v15 = vld [vmem:[#allocation10 + $0x10] sm:$0xff]  ;;  %v958_v16 = vld [vmem:[#allocation12 + $0x38] sm:$0xff] }
 0x1c0   : > { %1531 = vmatpush3.msra.mxu0 %v779_v60  ;;  %1585 = vmatpush3.msra.mxu1 %v964_v4  ;;  %v768_v17 = vld [vmem:[#allocation10 + $0x8] sm:$0xff]  ;;  %v957_v18 = vld [vmem:[#allocation12 + $0x30] sm:$0xff]  ;;  %v767_v19 = vld [vmem:[#allocation10] sm:$0xff] }
 0x1c1   : > { %1532 = vmatprep.subr.mxu0 %v778_v62  ;;  %1586 = vmatprep.subr.mxu1 %v963_v6  ;;  %v956_v20 = vld [vmem:[#allocation12 + $0x28] sm:$0xff]  ;;  %v752_v21 = vld [vmem:[#allocation2] sm:$0xff]  ;;  %v753_v23 = vld [vmem:[#allocation2 + $0x58] sm:$0xff] }
 0x1c2   : > { %1533 = vmatpush3.msra.mxu0 %v778_v62  ;;  %1587 = vmatpush3.msra.mxu1 %v963_v6  ;;  %v955_v22 = vld [vmem:[#allocation12 + $0x20] sm:$0xff]  ;;  %v754_v24 = vld [vmem:[#allocation2 + $0x18] sm:$0xff]  ;;  %v755_v25 = vld [vmem:[#allocation2 + $0x50] sm:$0xff] }
 0x1c3   : > { %1534 = vmatprep.subr.mxu0 %v777_v63  ;;  %1588 = vmatprep.subr.mxu1 %v962_v8  ;;  %v756_v26 = vld [vmem:[#allocation2 + $0x68] sm:$0xff]  ;;  %v759_v29 = vld [vmem:[#allocation2 + $0x40] sm:$0xff]  ;;  %v761_v31 = vld [vmem:[#allocation2 + $0x10] sm:$0xff] }
 0x1c4   : > { %1535 = vmatpush3.msra.mxu0 %v777_v63  ;;  %1589 = vmatpush3.msra.mxu1 %v962_v8  ;;  %v757_v27 = vld [vmem:[#allocation2 + $0x8] sm:$0xff]  ;;  %v760_v30 = vld [vmem:[#allocation2 + $0x20] sm:$0xff]  ;;  %v762_v32 = vld [vmem:[#allocation2 + $0x38] sm:$0xff] }
 0x1c5   : > { %1536 = vmatprep.subr.mxu0 %v776_v0  ;;  %1590 = vmatprep.subr.mxu1 %v961_v10  ;;  %v758_v28 = vld [vmem:[#allocation2 + $0x48] sm:$0xff]  ;;  %v763_v33 = vld [vmem:[#allocation2 + $0x60] sm:$0xff]  ;;  %v764_v34 = vld [vmem:[#allocation2 + $0x70] sm:$0xff] }
 0x1c6   : > { %1537 = vmatpush3.msra.mxu0 %v776_v0  ;;  %1591 = vmatpush3.msra.mxu1 %v961_v10  ;;  %v765_v35 = vld [vmem:[#allocation2 + $0x78] sm:$0xff]  ;;  %v766_v36 = vld [vmem:[#allocation2 + $0x28] sm:$0xff]  ;;  %v953_v38 = vld [vmem:[#allocation12 + $0x10] sm:$0xff] }
 0x1c7   : > { %1538 = vmatprep.subr.mxu0 %v775_v3  ;;  %1592 = vmatprep.subr.mxu1 %v960_v12  ;;  %v954_v37 = vld [vmem:[#allocation12 + $0x18] sm:$0xff]  ;;  %v952_v39 = vld [vmem:[#allocation12 + $0x8] sm:$0xff]  ;;  %v951_v40 = vld [vmem:[#allocation12] sm:$0xff] }
 0x1c8   : > { %1539 = vmatpush3.msra.mxu0 %v775_v3  ;;  %1593 = vmatpush3.msra.mxu1 %v960_v12  ;;  %v1322_v41 = vld [vmem:[%s2687_s6] ss:$0 sm:$0xff] }
 0x1c9   : > { %1540 = vmatprep.subr.mxu0 %v774_v5  ;;  %1594 = vmatprep.subr.mxu1 %v959_v14 }
 0x1ca   : > { %1541 = vmatpush3.msra.mxu0 %v774_v5  ;;  %1595 = vmatpush3.msra.mxu1 %v959_v14 }
 0x1cb   : > { %1542 = vmatprep.subr.mxu0 %v773_v7  ;;  %1596 = vmatprep.subr.mxu1 %v958_v16 }
 0x1cc   : > { %1543 = vmatpush3.msra.mxu0 %v773_v7  ;;  %1597 = vmatpush3.msra.mxu1 %v958_v16 }
 0x1cd   : > { %1544 = vmatprep.subr.mxu0 %v772_v9  ;;  %1598 = vmatprep.subr.mxu1 %v957_v18 }
 0x1ce   : > { %1545 = vmatpush3.msra.mxu0 %v772_v9  ;;  %1599 = vmatpush3.msra.mxu1 %v957_v18 }
 0x1cf   : > { %1546 = vmatprep.subr.mxu0 %v771_v11  ;;  %1600 = vmatprep.subr.mxu1 %v956_v20 }
 0x1d0   : > { %1547 = vmatpush3.msra.mxu0 %v771_v11  ;;  %1601 = vmatpush3.msra.mxu1 %v956_v20 }
 0x1d1   : > { %1548 = vmatprep.subr.mxu0 %v770_v13  ;;  %1602 = vmatprep.subr.mxu1 %v955_v22 }
 0x1d2   : > { %1549 = vmatpush3.msra.mxu0 %v770_v13  ;;  %1603 = vmatpush3.msra.mxu1 %v955_v22 }
 0x1d3   : > { %1550 = vmatprep.subr.mxu0 %v769_v15  ;;  %1604 = vmatprep.subr.mxu1 %v954_v37 }
 0x1d4   : > { %1551 = vmatpush3.msra.mxu0 %v769_v15  ;;  %1605 = vmatpush3.msra.mxu1 %v954_v37 }
 0x1d5   : > { %1552 = vmatprep.subr.mxu0 %v768_v17  ;;  %1606 = vmatprep.subr.mxu1 %v953_v38 }
 0x1d6   : > { %1553 = vmatpush3.msra.mxu0 %v768_v17  ;;  %1607 = vmatpush3.msra.mxu1 %v953_v38 }
 0x1d7   : > { %1554 = vmatprep.subr.mxu0 %v767_v19  ;;  %1608 = vmatprep.subr.mxu1 %v952_v39 }
 0x1d8   : > { %1555 = vmatpush3.msra.mxu0 %v767_v19  ;;  %1609 = vmatpush3.msra.mxu1 %v952_v39 }
 0x1d9   : > { %1557 = vmatmul.mubr.f32.vlgmr.msra.gmra.mxu0 %v752_v21  ;;  %1610 = vmatprep.subr.mxu1 %v951_v40 }
 0x1da   : > { %1559 = vmatprep.mubr.f32.mxu0 %v753_v23  ;;  %1611 = vmatpush3.msra.mxu1 %v951_v40 }
 0x1dd   : > { %1560 = vmatmul.mubr.f32.gmra.mxu0 %v754_v24 }
 0x1de   : > { %1562 = vmatprep.mubr.f32.mxu0 %v755_v25 }
 0x1e1   : > { %1563 = vmatmul.mubr.f32.gmra.mxu0 %v756_v26  ;;  %v1323_v26 = vld [vmem:[%s2688_s27] ss:$0 sm:$0xff] }
 0x1e2   : > { %1565 = vmatprep.mubr.f32.mxu0 %v757_v27 }
 0x1e5   : > { %1566 = vmatmul.mubr.f32.gmra.mxu0 %v758_v28 }
 0x1e6   : > { %1568 = vmatprep.mubr.f32.mxu0 %v759_v29 }
 0x1e9   : > { %1569 = vmatmul.mubr.f32.gmra.mxu0 %v760_v30 }
 0x1ea   : > { %1571 = vmatprep.mubr.f32.mxu0 %v761_v31 }
 0x1ed   : > { %1572 = vmatmul.mubr.f32.gmra.mxu0 %v762_v32 }
 0x1ee   : > { %1574 = vmatprep.mubr.f32.mxu0 %v763_v33 }
 0x1f1   : > { %1575 = vmatmul.mubr.f32.gmra.mxu0 %v764_v34 }
 0x1f2   : > { %1577 = vmatprep.mubr.f32.mxu0 %v765_v35 }
 0x1f5   : > { %1578 = vmatmul.mubr.f32.gmra.mxu0 %v766_v36 }
 0x299   : > { %v1558_v42 = vpop.f32.mrf.mxu0 }
 0x29a   : > { %v862_v43 = vadd.f32 %v1558_v42, %v1322_v41 }
 0x29b   : > { %v856_v44 = vpop.f32.mrf.mxu0 }
 0x29c   : > { %v857_v45 = vadd.f32 %v1322_v41, %v856_v44  ;;  %v936_v48 = vmax.f32 %v862_v43, 0.0 }
 0x29d   : > { %v1561_v46 = vpop.f32.mrf.mxu0 }
 0x29e   : > { %v935_v47 = vmax.f32 %v857_v45, 0.0  ;;  %v872_v49 = vadd.f32 %v1561_v46, %v1322_v41 }
 0x29f   : > { %v866_v50 = vpop.f32.mrf.mxu0 }
 0x2a0   : > { %v867_v51 = vadd.f32 %v1322_v41, %v866_v50  ;;  %1612 = vmatprep.mubr.f32.mxu1 %v935_v47  ;;  %v938_v54 = vmax.f32 %v872_v49, 0.0 }
 0x2a1   : > { %v1564_v52 = vpop.f32.mrf.mxu0  ;;  %1613 = vmatmul.mubr.f32.vlgmr.msra.gmra.mxu1 %v936_v48 }
 0x2a2   : > { %v937_v53 = vmax.f32 %v867_v51, 0.0  ;;  %v882_v55 = vadd.f32 %v1564_v52, %v1322_v41 }
 0x2a3   : > { %v876_v56 = vpop.f32.mrf.mxu0 }
 0x2a4   : > { %v877_v57 = vadd.f32 %v1322_v41, %v876_v56  ;;  %1615 = vmatprep.mubr.f32.mxu1 %v937_v53  ;;  %v940_v60 = vmax.f32 %v882_v55, 0.0 }
 0x2a5   : > { %v1567_v58 = vpop.f32.mrf.mxu0  ;;  %1616 = vmatmul.mubr.f32.gmra.mxu1 %v938_v54 }
 0x2a6   : > { %v939_v59 = vmax.f32 %v877_v57, 0.0  ;;  %v892_v61 = vadd.f32 %v1567_v58, %v1322_v41 }
 0x2a7   : > { %v886_v62 = vpop.f32.mrf.mxu0 }
 0x2a8   : > { %v887_v63 = vadd.f32 %v1322_v41, %v886_v62  ;;  %1618 = vmatprep.mubr.f32.mxu1 %v939_v59  ;;  %v942_v2 = vmax.f32 %v892_v61, 0.0 }
 0x2a9   : > { %v1570_v0 = vpop.f32.mrf.mxu0  ;;  %1619 = vmatmul.mubr.f32.gmra.mxu1 %v940_v60 }
 0x2aa   : > { %v941_v1 = vmax.f32 %v887_v63, 0.0  ;;  %v902_v3 = vadd.f32 %v1570_v0, %v1322_v41 }
 0x2ab   : > { %v896_v4 = vpop.f32.mrf.mxu0 }
 0x2ac   : > { %v897_v5 = vadd.f32 %v1322_v41, %v896_v4  ;;  %1621 = vmatprep.mubr.f32.mxu1 %v941_v1  ;;  %v944_v8 = vmax.f32 %v902_v3, 0.0 }
 0x2ad   : > { %v1573_v6 = vpop.f32.mrf.mxu0  ;;  %1622 = vmatmul.mubr.f32.gmra.mxu1 %v942_v2 }
 0x2ae   : > { %v943_v7 = vmax.f32 %v897_v5, 0.0  ;;  %v912_v9 = vadd.f32 %v1573_v6, %v1322_v41 }
 0x2af   : > { %v906_v10 = vpop.f32.mrf.mxu0 }
 0x2b0   : > { %v907_v11 = vadd.f32 %v1322_v41, %v906_v10  ;;  %1624 = vmatprep.mubr.f32.mxu1 %v943_v7  ;;  %v946_v14 = vmax.f32 %v912_v9, 0.0 }
 0x2b1   : > { %v1576_v12 = vpop.f32.mrf.mxu0  ;;  %1625 = vmatmul.mubr.f32.gmra.mxu1 %v944_v8 }
 0x2b2   : > { %v945_v13 = vmax.f32 %v907_v11, 0.0  ;;  %v922_v15 = vadd.f32 %v1576_v12, %v1322_v41 }
 0x2b3   : > { %v916_v16 = vpop.f32.mrf.mxu0 }
 0x2b4   : > { %v917_v17 = vadd.f32 %v1322_v41, %v916_v16  ;;  %1627 = vmatprep.mubr.f32.mxu1 %v945_v13  ;;  %v948_v20 = vmax.f32 %v922_v15, 0.0 }
 0x2b5   : > { %v1579_v18 = vpop.f32.mrf.mxu0  ;;  %1628 = vmatmul.mubr.f32.gmra.mxu1 %v946_v14 }
 0x2b6   : > { %v947_v19 = vmax.f32 %v917_v17, 0.0  ;;  %v932_v21 = vadd.f32 %v1579_v18, %v1322_v41 }
 0x2b7   : > { %v926_v22 = vpop.f32.mrf.mxu0 }
 0x2b8   : > { %v927_v23 = vadd.f32 %v1322_v41, %v926_v22  ;;  %1630 = vmatprep.mubr.f32.mxu1 %v947_v19  ;;  %v950_v25 = vmax.f32 %v932_v21, 0.0 }
 0x2b9   : > { %1631 = vmatmul.mubr.f32.gmra.mxu1 %v948_v20 }
 0x2ba   : > { %v949_v24 = vmax.f32 %v927_v23, 0.0 }
 0x2bc   : > { %1633 = vmatprep.mubr.f32.mxu1 %v949_v24 }
 0x2bd   : > { %1634 = vmatmul.mubr.f32.gmra.mxu1 %v950_v25 }
 0x361   : > { %v1614_v27 = vpop.f32.mrf.mxu1 }
 0x362   : > { %v1046_v28 = vadd.f32 %v1614_v27, %v1323_v26 }
 0x363   : > { %v1040_v29 = vpop.f32.mrf.mxu1 }
 0x364   : > { %1120 = vst [vmem:[%s2474_s15 + $0x8] sm:$0xff] %v1046_v28  ;;  %v1041_v30 = vadd.f32 %v1323_v26, %v1040_v29 }
 0x365   : > { %v1617_v31 = vpop.f32.mrf.mxu1 }
 0x366   : > { %1119 = vst [vmem:[%s2474_s15] sm:$0xff] %v1041_v30  ;;  %v1056_v32 = vadd.f32 %v1617_v31, %v1323_v26 }
 0x367   : > { %v1050_v33 = vpop.f32.mrf.mxu1 }
 0x368   : > { %1122 = vst [vmem:[%s2474_s15 + $0x18] sm:$0xff] %v1056_v32  ;;  %v1051_v34 = vadd.f32 %v1323_v26, %v1050_v33 }
 0x369   : > { %v1620_v35 = vpop.f32.mrf.mxu1 }
 0x36a   : > { %1121 = vst [vmem:[%s2474_s15 + $0x10] sm:$0xff] %v1051_v34  ;;  %v1066_v36 = vadd.f32 %v1620_v35, %v1323_v26 }
 0x36b   : > { %v1060_v37 = vpop.f32.mrf.mxu1 }
 0x36c   : > { %1124 = vst [vmem:[%s2474_s15 + $0x28] sm:$0xff] %v1066_v36  ;;  %v1061_v38 = vadd.f32 %v1323_v26, %v1060_v37 }
 0x36d   : > { %v1623_v39 = vpop.f32.mrf.mxu1 }
 0x36e   : > { %1123 = vst [vmem:[%s2474_s15 + $0x20] sm:$0xff] %v1061_v38  ;;  %v1076_v40 = vadd.f32 %v1623_v39, %v1323_v26 }
 0x36f   : > { %v1070_v41 = vpop.f32.mrf.mxu1 }
 0x370   : > { %1126 = vst [vmem:[%s2474_s15 + $0x38] sm:$0xff] %v1076_v40  ;;  %v1071_v42 = vadd.f32 %v1323_v26, %v1070_v41 }
 0x371   : > { %v1626_v43 = vpop.f32.mrf.mxu1 }
 0x372   : > { %1125 = vst [vmem:[%s2474_s15 + $0x30] sm:$0xff] %v1071_v42  ;;  %v1086_v44 = vadd.f32 %v1626_v43, %v1323_v26 }
 0x373   : > { %v1080_v45 = vpop.f32.mrf.mxu1 }
 0x374   : > { %1128 = vst [vmem:[%s2474_s15 + $0x48] sm:$0xff] %v1086_v44  ;;  %v1081_v46 = vadd.f32 %v1323_v26, %v1080_v45 }
 0x375   : > { %v1629_v47 = vpop.f32.mrf.mxu1 }
 0x376   : > { %1127 = vst [vmem:[%s2474_s15 + $0x40] sm:$0xff] %v1081_v46  ;;  %v1096_v48 = vadd.f32 %v1629_v47, %v1323_v26 }
 0x377   : > { %v1090_v49 = vpop.f32.mrf.mxu1 }
 0x378   : > { %1130 = vst [vmem:[%s2474_s15 + $0x58] sm:$0xff] %v1096_v48  ;;  %v1091_v50 = vadd.f32 %v1323_v26, %v1090_v49 }
 0x379   : > { %v1632_v51 = vpop.f32.mrf.mxu1 }
 0x37a   : > { %1129 = vst [vmem:[%s2474_s15 + $0x50] sm:$0xff] %v1091_v50  ;;  %v1106_v52 = vadd.f32 %v1632_v51, %v1323_v26 }
 0x37b   : > { %v1100_v53 = vpop.f32.mrf.mxu1 }
 0x37c   : > { %1132 = vst [vmem:[%s2474_s15 + $0x68] sm:$0xff] %v1106_v52  ;;  %v1101_v54 = vadd.f32 %v1323_v26, %v1100_v53 }
 0x37d   : > { %v1635_v55 = vpop.f32.mrf.mxu1 }
 0x37e   : > { %1131 = vst [vmem:[%s2474_s15 + $0x60] sm:$0xff] %v1101_v54  ;;  %v1116_v56 = vadd.f32 %v1635_v55, %v1323_v26 }
 0x37f   : > { %v1110_v57 = vpop.f32.mrf.mxu1 }
 0x380   : > { %1134 = vst [vmem:[%s2474_s15 + $0x78] sm:$0xff] %v1116_v56  ;;  %v1111_v58 = vadd.f32 %v1323_v26, %v1110_v57 }
 0x382   : > { %1133 = vst [vmem:[%s2474_s15 + $0x70] sm:$0xff] %v1111_v58 }
 0x383 PF: > { %s2689_s3 = sld [smem:[#allocation21_spill]]  ;;  %s1149_s16 = sshll.u32 %s2474_s15, 4  ;;  %s2531_s16 = int_to_ptr.vmem [resolvable:$true] %s1149_s16 }
 0x384   : > { %s2690_s25 = sld [smem:[#allocation34_spill]]  ;;  %s2535_s0 = scalar_lea.sflag [#allocation6], %s394_s2 }
 0x385   : > { %s1967_s5 = scalar_lea.vmem %s2531_s16, 2048  ;;  %s2134_s20 = smov [#allocation13]  }
 0x386   : > { %p1968_p5 = scmp.ne.s32.totalorder %s2531_s16, %s1967_s5  ;;  %s1971_s7 = sshll.u32 %s2134_s20, 4  ;;  %s1972_s7 = int_to_ptr.vmem [resolvable:$false] %s1971_s7 }
 0x387   : > { %s1973_s8 = scalar_lea.vmem %s1972_s7, 4096  ;;  %p1974_p6 = scmp.lt.s32.totalorder %s2531_s16, %s1972_s7 }
 0x388   : > { %p1969_p0 = pnand %p1968_p5, %p2420_p1  ;;  %p1975_p9 = scmp.lt.s32.totalorder %s1973_s8, %s1967_s5 }
 0x389   : > { %s1332_s23 = sshll.u32 %s2689_s3, 11 }
 0x38a   : > { %s2528_s10 = scalar_lea.hbm %s2690_s25, %s1332_s23  ;;  %p1970_p3 = pneg %p1969_p0 }
 0x38b   : > { %p1976_p11 = por %p1975_p9, %p1974_p6 }
 0x38d   : > { %p1977_p13 = pnand %p1976_p11, %p1970_p3 }
 0x38f   : > { %1980 = shalt.err (!%p1977_p13)
}
 0x390   : > { %s1981_s2 = scalar_lea.hbm %s2528_s10, 2048  ;;  %s1985_s1 = scalar_lea.hbm %s2690_s25, 4096 }
 0x391   : > { %p1982_p2 = scmp.ne.s32.totalorder %s2528_s10, %s1981_s2  ;;  %p1986_p4 = scmp.lt.s32.totalorder %s2528_s10, %s2690_s25 }
 0x392   : > { %p1987_p7 = scmp.lt.s32.totalorder %s1985_s1, %s1981_s2 }
 0x393   : > { %p1983_p8 = pnand %p1982_p2, %p2420_p1 }
 0x394   : > { %p1988_p12 = por %p1987_p7, %p1986_p4 }
 0x395   : > { %p1984_p10 = pneg %p1983_p8 }
 0x397   : > { %p1989_p5 = pnand %p1988_p12, %p1984_p10 }
 0x399   : > { %1992 = shalt.err (!%p1989_p5)
}
 0x39a   : > { %s2135_s3 = smov 128   ;;  %s2136_s23 = smov 8  }
 0x39b   : > { %1682 = dma.vmem_to_hbm [thread:$0]  (%p2420_p1), %s2531_s16, 2048, %s2528_s10, %s2535_s0, %s2135_s3, %s2135_s3, %s2136_s23  }
 0x39c PF: > { %p1710_p0 = scmp.ge.s32.totalorder %s2123_s19, 2  ;;  %s1164_s4 = sand.u32 1, %s2071_s29  }
 0x39d   : > { %p2691_p3 = scmp.ne.s32.totalorder %s2674_s22, 0  ;;  %s1165_s11 = scalar_lea.sflag [#allocation6], %s1164_s4 }
 0x39f   : > { %p1702_p6 = pnand %p1710_p0, %p2691_p3 }
 0x3a1   : > { %p1703_p9 = pneg %p1702_p6 }
 0x3a3   : > { %2066 = dma.done.wait (%p1703_p9), %s1165_s11, 2048  }
 0x3a4   : > { %2068 = vsyncadd (%p1703_p9), %s1165_s11, 4294965248  ;;  %s29_s19 = sadd.s32 1, %s2123_s19   ;;  %s2693_s10 = sld [smem:[#allocation19_spill]] }
 0x3a5   : > { %p2563_p11 = scmp.ge.s32.totalorder %s29_s19, 6   ;;  %s2694_s28 = sld [smem:[#allocation25_spill]] }
 0x3a6   : > { %s2695_s22 = sld [smem:[#allocation23_spill]]  ;;  %s2697_s29 = smov %s2075_s30 }
 0x3a7   : > { %s2696_s20 = sld [smem:[#allocation24_spill]]  ;;  %s2698_s30 = smov %s2079_s9 }
 0x3a8   : > { %s2699_s9 = smov %s2403_s26  ;;  %s2700_s11 = smov %s2091_s12 }
 0x3a9   : > { %s2702_s0 = smov %s2099_s13  ;;  %s2703_s13 = smov %s2103_s14 }
 0x3aa   : > { %s2704_s14 = smov %s2367_s21  ;;  %s2705_s15 = smov %s2115_s17 }
 0x3ab   : > { %s2701_s12 = smov %s2694_s28  ;;  %s2706_s16 = smov %s2119_s18 }
 0x3ac   : > { %s2707_s17 = smov %s2695_s22  ;;  %28 = sbr.rel (!%p2563_p11) target bundleno = 23 (0x17), region = 137 }
 0x3ad   : > { %s2708_s18 = smov %s2696_s20 }
 0x3b1   :  { %1170 = vsyncpa [#allocation5], 1 }
 0x3b2   :  { %1172 = vsyncpa [#allocation5 + $0x1], 1 }
 0x3b3   :  { %1173 = vsyncpa [#allocation8], 1 }
 0x3b4   :  { %1175 = vsyncpa [#allocation8 + $0x1], 1 }
 0x3b5   :  { %1176 = vsyncpa [#allocation11], 1 }
 0x3b6   :  { %1177 = vsyncpa [#allocation6], 1 }
 0x3b7   :  { %1179 = vsyncpa [#allocation6 + $0x1], 1 }

</bundles_post_ra>
